<compile_context>
chip_gen: v7x
topology: tpu7x:2x2x1
jax: 0.10.0
libtpu: 0.0.40
codegen_flags: <defaults>
</compile_context>

<pallas_src>
import jax
import jax.numpy as jnp
from jax.experimental import pallas as pl
from jax.experimental.pallas import tpu as pltpu


_EPS = 1e-12
_LANE = 128
_SUBLANE = 8
# Double-buffered input + output tiles must fit comfortably in VMEM on every
# generation (v7x has only 64 MiB per TensorCore).
_TILE_VMEM_BUDGET = 32 * 1024 * 1024
_VMEM_LIMIT_BYTES = 48 * 1024 * 1024


def _norm01_kernel(x_ref, o_ref):
    # x_ref / o_ref: (TILE_N, CHW_pad) tile; each row is one flattened sample.
    x = jnp.maximum(x_ref[...].astype(jnp.float32), 0.0)   # ReLU (VPU)
    m = jnp.max(x, axis=1, keepdims=True)                   # per-row max (XLU)
    inv = pl.reciprocal(m + _EPS, approx=True)               # EUP reciprocal
    o_ref[...] = (x * inv).astype(o_ref.dtype)               # plain vmul


def _round_up(v, m):
    return ((v + m - 1) // m) * m


def norm2zeroone(x):
    """x: (N, C, H, W) float32 -> relu(x) / (per-sample max + 1e-12)."""
    N, C, H, W = x.shape
    chw = C * H * W
    x2 = x.reshape(N, chw)

    # Lane-dense last dim: pad the flattened axis to a multiple of 128. Zero
    # padding never changes the per-row max since everything is >= 0 post-ReLU.
    chw_pad = _round_up(chw, _LANE)
    if chw_pad != chw:
        x2 = jnp.pad(x2, ((0, 0), (0, chw_pad - chw)))

    # Pick TILE_N (multiple of the 8-row f32 sublane count) from the VMEM
    # budget: 2 operands (in + out) x 2 (double buffering) tiles resident.
    itemsize = jnp.dtype(x.dtype).itemsize
    rows_budget = max(_SUBLANE, _TILE_VMEM_BUDGET // (4 * chw_pad * itemsize))
    tile_n = max(_SUBLANE, min(256, (rows_budget // _SUBLANE) * _SUBLANE))
    n8 = _round_up(N, _SUBLANE)
    if n8 > _SUBLANE:
        # Keep at least 2 grid steps when there are enough rows (v7x: 2 TCs).
        tile_n = min(tile_n, max(_SUBLANE, n8 // 2))
    else:
        tile_n = _SUBLANE
    # TODO(synk): for very large C*H*W where even an 8-row double-buffered tile
    # exceeds the VMEM budget, switch to a 2-pass (chunked-CHW running-max)
    # grid instead of one monolithic row per sample.

    n_pad = _round_up(N, tile_n)
    if n_pad != N:
        x2 = jnp.pad(x2, ((0, n_pad - N), (0, 0)))

    out2 = pl.pallas_call(
        _norm01_kernel,
        out_shape=jax.ShapeDtypeStruct((n_pad, chw_pad), x.dtype),
        grid_spec=pltpu.PrefetchScalarGridSpec(
            num_scalar_prefetch=0,
            grid=(n_pad // tile_n,),
            in_specs=[pl.BlockSpec((tile_n, chw_pad), lambda i: (i, 0))],
            out_specs=pl.BlockSpec((tile_n, chw_pad), lambda i: (i, 0)),
        ),
        compiler_params=pltpu.CompilerParams(
            dimension_semantics=("parallel",),
            vmem_limit_bytes=_VMEM_LIMIT_BYTES,
        ),
    )(x2)

    out2 = out2[:N, :chw]
    return out2.reshape(N, C, H, W)


if __name__ == "__main__":
    key = jax.random.PRNGKey(0)
    x = jax.random.normal(key, (2, 4, 16, 16), dtype=jnp.float32)

    out = jax.block_until_ready(norm2zeroone(x))

    # Reference in plain JAX.
    xr = jnp.maximum(x, 0.0)
    ref = xr / (jnp.max(xr, axis=(1, 2, 3), keepdims=True) + 1e-12)
    assert out.shape == x.shape
    # In-kernel reciprocal uses approx=True (EUP) -> allow small relative slack.
    assert jnp.allclose(out, ref, rtol=1e-2, atol=1e-6)
    assert bool(jnp.all(jnp.isfinite(out)))

    # Edge case: a fully-negative sample must map to zeros (not NaN).
    x_edge = x.at[0].set(-jnp.abs(x[0]) - 1.0)
    out_edge = jax.block_until_ready(norm2zeroone(x_edge))
    assert bool(jnp.all(out_edge[0] == 0.0))

    print("KERNEL_OK")
</pallas_src>

<mosaic_0001>
module attributes {stable_mosaic.version = 11 : i64} {
  func.func @_norm01_kernel(%arg0: i32, %arg1: memref<8x1024xf32, #tpu.memory_space<vmem>>, %arg2: memref<8x1024xf32, #tpu.memory_space<vmem>>) attributes {dimension_semantics = [#tpu.dimension_semantics<parallel>], iteration_bounds = array<i64: 1>, scalar_prefetch = 0 : i64, scratch_operands = 0 : i64, tpu.core_type = #tpu.core_type<tc>, window_params = [{transform_indices = @transform_0, window_bounds = array<i64: 8, 1024>}, {transform_indices = @transform_1, window_bounds = array<i64: 8, 1024>}]} {
    %c0 = arith.constant 0 : index
    %c0_0 = arith.constant 0 : index
    %0 = vector.load %arg1[%c0, %c0_0] : memref<8x1024xf32, #tpu.memory_space<vmem>>, vector<8x1024xf32>
    %cst = arith.constant 0.000000e+00 : f32
    %1 = vector.broadcast %cst : f32 to vector<8x1024xf32>
    %2 = arith.maximumf %0, %1 : vector<8x1024xf32>
    %cst_1 = arith.constant dense<0xFF800000> : vector<8xf32>
    %3 = vector.multi_reduction <maximumf>, %2, %cst_1 [1] : vector<8x1024xf32> to vector<8xf32>
    %4 = vector.shape_cast %3 : vector<8xf32> to vector<8x1xf32>
    %cst_2 = arith.constant 9.99999996E-13 : f32
    %5 = vector.broadcast %cst_2 : f32 to vector<8x1xf32>
    %6 = arith.addf %4, %5 : vector<8x1xf32>
    %7 = tpu.reciprocal %6 {approx = true} : vector<8x1xf32> -> vector<8x1xf32>
    %8 = vector.broadcast %7 : vector<8x1xf32> to vector<8x1024xf32>
    %9 = arith.mulf %2, %8 : vector<8x1024xf32>
    %c0_3 = arith.constant 0 : index
    %c0_4 = arith.constant 0 : index
    %10 = vector.load %arg2[%c0_3, %c0_4] : memref<8x1024xf32, #tpu.memory_space<vmem>>, vector<8x1024xf32>
    tpu.vector_store %arg2[%c0_3, %c0_4], %9 {strides = array<i32>} : memref<8x1024xf32, #tpu.memory_space<vmem>>, vector<8x1024xf32>,
    return
  }
  func.func @transform_0(%arg0: i32) -> (i32, i32) {
    %c0_i32 = arith.constant 0 : i32
    %c0_i32_0 = arith.constant 0 : i32
    return %arg0, %c0_i32 : i32, i32
  }
  func.func @transform_1(%arg0: i32) -> (i32, i32) {
    %c0_i32 = arith.constant 0 : i32
    %c0_i32_0 = arith.constant 0 : i32
    return %arg0, %c0_i32 : i32, i32
  }
}

</mosaic_0001>

<bundles_post_ra>
// kernel: tpu_custom_call.1
= control target key start
LH: loop header
LB: loop body
LE: loop exit
PB: predicated region body
PF: predicated region fallthrough
CT: control target
= control target key end

     0   :  { %6 = vsyncpa [#allocation3], 0  ;;  %s167_s0 = inlined_call_operand.hbm [shape: f32[8,1024], index: 0, kind: input, shape index: {}]   ;;  %s168_s1 = inlined_call_operand.hbm [shape: f32[8,1024], index: 1, kind: output, shape index: {}]  }
   0x1   :  { %7 = vsyncpa [#allocation4], 0  ;;  %s131_s6 = smov [#allocation2]   ;;  %s83_s10 = scalar_lea.hbm %s167_s0, 1024 }
   0x2   :  { %s14_s7 = sshll.u32 %s131_s6, 4  ;;  %p84_p0 = scmp.ne.s32.totalorder %s167_s0, %s83_s10  ;;  %s15_s7 = int_to_ptr.vmem [resolvable:$true] %s14_s7 }
   0x3   :  { %p87_p1 = scmp.lt.u32.totalorder %s83_s10, %s167_s0 }
   0x5   :  { %p89_p2 = pnand %p87_p1, %p84_p0 }
   0x7   :  { %92 = shalt.err (!%p89_p2)
}
   0x8   :  { %s93_s15 = scalar_lea.vmem %s15_s7, 1024  ;;  %p98_p4 = scmp.lt.s32.totalorder %s15_s7, %s15_s7 }
   0x9   :  { %p94_p3 = scmp.ne.s32.totalorder %s15_s7, %s93_s15  ;;  %p99_p5 = scmp.lt.s32.totalorder %s93_s15, %s93_s15 }
   0xb   :  { %p100_p6 = por %p99_p5, %p98_p4 }
   0xd   :  { %p101_p7 = pnand %p100_p6, %p94_p3 }
   0xf   :  { %104 = shalt.err (!%p101_p7)
}
  0x10   :  { %17 = dma.hbm_to_vmem [thread:$0]  %s167_s0, 1024, %s15_s7, [#allocation3]  }
  0x11   :  { %127 = dma.done.wait [#allocation3], 1024  }
  0x12   :  { %128 = vsyncadd [#allocation3], 4294966272  ;;  %v21_v0 = vld [vmem:[#allocation2] sm:$0xff]  ;;  %v22_v1 = vld [vmem:[#allocation2 + $0x8] sm:$0xff]  ;;  %s132_s0 = smov [#allocation5]  }
  0x13   :  { %v23_v2 = vld [vmem:[#allocation2 + $0x10] sm:$0xff]  ;;  %v24_v3 = vld [vmem:[#allocation2 + $0x18] sm:$0xff]  ;;  %v25_v4 = vld [vmem:[#allocation2 + $0x20] sm:$0xff]  ;;  %v29_v6 = vmax.f32 %v21_v0, 0.0  ;;  %v30_v7 = vmax.f32 %v22_v1, 0.0  ;;  %s70_s18 = sshll.u32 %s132_s0, 4  ;;  %s71_s18 = int_to_ptr.vmem [resolvable:$true] %s70_s18 }
  0x14   :  { %v26_v5 = vld [vmem:[#allocation2 + $0x28] sm:$0xff]  ;;  %v31_v8 = vmax.f32 %v23_v2, 0.0  ;;  %v27_v9 = vld [vmem:[#allocation2 + $0x30] sm:$0xff]  ;;  %v28_v10 = vld [vmem:[#allocation2 + $0x38] sm:$0xff]  ;;  %v32_v11 = vmax.f32 %v24_v3, 0.0  ;;  %v33_v12 = vmax.f32 %v25_v4, 0.0  ;;  %p110_p9 = scmp.lt.s32.totalorder %s71_s18, %s71_s18 }
  0x15   :  { %v34_v13 = vmax.f32 %v26_v5, 0.0  ;;  %v35_v14 = vmax.f32 %v27_v9, 0.0  ;;  %v36_v15 = vmax.f32 %v28_v10, 0.0  ;;  %s105_s19 = scalar_lea.vmem %s71_s18, 1024 }
  0x16   :  { %v37_v16 = vmax.f32 %v29_v6, %v33_v12  ;;  %p106_p8 = scmp.ne.s32.totalorder %s71_s18, %s105_s19  ;;  %p111_p10 = scmp.lt.s32.totalorder %s105_s19, %s105_s19 }
  0x17   :  { %v38_v17 = vmax.f32 %v30_v7, %v34_v13  ;;  %v39_v18 = vmax.f32 %v31_v8, %v35_v14  ;;  %v40_v19 = vmax.f32 %v32_v11, %v36_v15 }
  0x18   :  { %p112_p11 = por %p111_p10, %p110_p9 }
  0x19   :  { %v41_v20 = vmax.f32 %v37_v16, %v38_v17  ;;  %v42_v21 = vmax.f32 %v39_v18, %v40_v19 }
  0x1a   :  { %p113_p12 = pnand %p112_p11, %p106_p8 }
  0x1b   :  { %v43_v22 = vmax.f32 %v41_v20, %v42_v21 }
  0x1d   :  { %44 = vmax.xlane.f32.xlu0 %v43_v22 }
  0xaa   :  { %v45_v23 = vpop.xlane.xlu0 %44 }
  0xab   :  { %v46_v24 = vadd.f32 1e-12, %v45_v23 }
  0xad   :  { %81 = vrcp.f32 %v46_v24 }
  0xb7   :  { %v82_v25 = vpop.eup %81 }
  0xb8   :  { %v48_v26 = vmul.f32 %v82_v25, %v29_v6  ;;  %v49_v27 = vmul.f32 %v82_v25, %v30_v7  ;;  %v50_v28 = vmul.f32 %v82_v25, %v31_v8  ;;  %v51_v29 = vmul.f32 %v82_v25, %v32_v11 }
  0xb9   :  { %v52_v30 = vmul.f32 %v82_v25, %v33_v12  ;;  %v53_v31 = vmul.f32 %v82_v25, %v34_v13  ;;  %v54_v32 = vmul.f32 %v82_v25, %v35_v14  ;;  %v55_v33 = vmul.f32 %v82_v25, %v36_v15 }
  0xba   :  { %56 = vst [vmem:[#allocation5] sm:$0xff] %v48_v26  ;;  %57 = vst [vmem:[#allocation5 + $0x8] sm:$0xff] %v49_v27 }
  0xbb   :  { %58 = vst [vmem:[#allocation5 + $0x10] sm:$0xff] %v50_v28  ;;  %59 = vst [vmem:[#allocation5 + $0x18] sm:$0xff] %v51_v29 }
  0xbc   :  { %60 = vst [vmem:[#allocation5 + $0x20] sm:$0xff] %v52_v30  ;;  %61 = vst [vmem:[#allocation5 + $0x28] sm:$0xff] %v53_v31 }
  0xbd   :  { %62 = vst [vmem:[#allocation5 + $0x30] sm:$0xff] %v54_v32  ;;  %63 = vst [vmem:[#allocation5 + $0x38] sm:$0xff] %v55_v33 }
  0xbe   :  { %116 = shalt.err (!%p113_p12)
}
  0xbf   :  { %s117_s22 = scalar_lea.hbm %s168_s1, 1024 }
  0xc0   :  { %p118_p13 = scmp.ne.s32.totalorder %s168_s1, %s117_s22  ;;  %p121_p0 = scmp.lt.u32.totalorder %s117_s22, %s168_s1 }
  0xc2   :  { %p123_p1 = pnand %p121_p0, %p118_p13 }
  0xc4   :  { %126 = shalt.err (!%p123_p1)
}
  0xc5   :  { %73 = dma.vmem_to_hbm [thread:$0]  %s71_s18, 1024, %s168_s1, [#allocation4]  }
  0xc6   :  { %129 = dma.done.wait [#allocation4], 1024  }
  0xc7   :  { %130 = vsyncadd [#allocation4], 4294966272 }
  0xc8   :  { %77 = vsyncpa [#allocation3], 1 }
  0xc9   :  { %78 = vsyncpa [#allocation4], 1 }

</bundles_post_ra>
